<compile_context>
chip_gen: v7x
topology: tpu7x:2x2x1
jax: 0.10.0
libtpu: 0.0.40
codegen_flags: <defaults>
</compile_context>

<pallas_src>
import jax
import jax.numpy as jnp
import numpy as np
from jax.experimental import pallas as pl
from jax.experimental.pallas import tpu as pltpu


def _locked_dropout_kernel(mask_ref, x_ref, o_ref):
    """mask_ref: [1, 1, H] scaled keep-mask for this batch row (same block is
    re-fetched for every seq tile -> 'locked' along seq by construction).
    x_ref / o_ref: [1, tS, H] lane-dense activation tiles."""
    # Native-dtype multiply (no f32 upcast): one vreg stream in, one out.
    o_ref[...] = x_ref[...] * mask_ref[...]


def _make_mask(key, batch, hidden, p, dtype):
    """One Bernoulli(1-p) draw per (batch, hidden) element, scaled by 1/(1-p).
    Shape (batch, 1, hidden), mirroring torch's (1, batch, hidden) mask."""
    keep = jax.random.bernoulli(key, 1.0 - p, (batch, 1, hidden))
    return jnp.where(keep, 1.0 / (1.0 - p), 0.0).astype(dtype)


def _choose_seq_tile(seq, hidden, itemsize, budget_bytes=2 * 1024 * 1024):
    """Largest seq-tile (multiple of 8, or the full seq) with <= ~2 MiB of x
    per tile: with double-buffered input + output that is <= ~8 MiB in flight,
    comfortably inside v7x's 64 MiB VMEM while still amortizing the ~0.35 us
    per-grid-step overhead (tile >= ~1 MiB for realistic H)."""
    if seq * hidden * itemsize <= budget_bytes:
        return seq
    ts = max(8, (budget_bytes // (hidden * itemsize)) // 8 * 8)
    return int(min(ts, seq))


def locked_dropout(x, *, p=0.3, key=None, training=True):
    """x: [batch, seq, hidden] padded tensor. Returns same shape/dtype."""
    if (not training) or p == 0.0:
        return x
    if key is None:
        key = jax.random.PRNGKey(0)

    B, S, H = x.shape
    mask = _make_mask(key, B, H, p, x.dtype)  # (B, 1, H), values {0, 1/(1-p)}

    ts = _choose_seq_tile(S, H, x.dtype.itemsize)
    grid = (B, pl.cdiv(S, ts))

    return pl.pallas_call(
        _locked_dropout_kernel,
        out_shape=jax.ShapeDtypeStruct(x.shape, x.dtype),
        grid=grid,
        in_specs=[
            # Same (1, 1, H) mask block for every seq tile of a batch row.
            pl.BlockSpec((1, 1, H), lambda b, s: (b, 0, 0)),
            # Lane-dense (full-H) activation tile; Pallas auto double-buffers
            # so the HBM DMA overlaps the VPU multiply.
            pl.BlockSpec((1, ts, H), lambda b, s: (b, s, 0)),
        ],
        out_specs=pl.BlockSpec((1, ts, H), lambda b, s: (b, s, 0)),
        compiler_params=pltpu.CompilerParams(
            # No carried state across grid steps -> both axes independent;
            # a parallel batch axis lets v7x shard across its 2 TensorCores.
            dimension_semantics=("parallel", "parallel"),
        ),
        cost_estimate=pl.CostEstimate(
            flops=x.size,
            transcendentals=0,
            bytes_accessed=2 * x.size * x.dtype.itemsize
            + mask.size * mask.dtype.itemsize,
        ),
        # Note: for production, pass input_output_aliases={1: 0} (donate x)
        # to avoid a second full-size HBM activation buffer; omitted here so
        # the demo can still read x for the reference check.
    )(mask, x)


if __name__ == "__main__":
    B, S, H = 4, 8, 128
    p = 0.3

    root = jax.random.PRNGKey(0)
    kx, kl, kmask = jax.random.split(root, 3)
    x = jax.random.normal(kx, (B, S, H), dtype=jnp.float32)
    lengths = jax.random.randint(kl, (B,), minval=1, maxval=S + 1)
    del lengths  # TODO(synk): only used by pack/unpack glue, not the math.

    out = locked_dropout(x, p=p, key=kmask, training=True)
    out = jax.block_until_ready(out)

    # --- sanity checks ---
    out_np = np.asarray(out)
    x_np = np.asarray(x)
    scale = 1.0 / (1.0 - p)

    # Reference: identical mask construction + broadcast multiply in plain JAX.
    mask_np = np.asarray(_make_mask(kmask, B, H, p, x.dtype))  # (B, 1, H)
    ref = x_np * mask_np
    assert np.allclose(out_np, ref, atol=1e-6), "kernel != reference"

    # Mask values are only {0, 1/(1-p)}.
    assert np.all(np.isclose(mask_np, 0.0) | np.isclose(mask_np, scale, atol=1e-5))

    # Dropped (batch, hidden) positions are zero for EVERY time step (locked).
    dropped = np.broadcast_to(mask_np == 0.0, out_np.shape)
    assert np.all(out_np[dropped] == 0.0), "mask not locked across seq"

    # Eval mode / p=0 is identity.
    assert np.array_equal(np.asarray(locked_dropout(x, p=p, training=False)), x_np)
    assert np.array_equal(np.asarray(locked_dropout(x, p=0.0, training=True)), x_np)

    print("KERNEL_OK")
</pallas_src>

<mosaic_0001>
module attributes {stable_mosaic.version = 11 : i64} {
  func.func @_locked_dropout_kernel(%arg0: i32, %arg1: i32, %arg2: memref<1x1x128xf32, #tpu.memory_space<vmem>>, %arg3: memref<1x8x128xf32, #tpu.memory_space<vmem>>, %arg4: memref<1x8x128xf32, #tpu.memory_space<vmem>>) attributes {dimension_semantics = [#tpu.dimension_semantics<parallel>, #tpu.dimension_semantics<parallel>], iteration_bounds = array<i64: 4, 1>, scalar_prefetch = 0 : i64, scratch_operands = 0 : i64, tpu.core_type = #tpu.core_type<tc>, window_params = [{transform_indices = @transform_0, window_bounds = array<i64: 1, 1, 128>}, {transform_indices = @transform_1, window_bounds = array<i64: 1, 8, 128>}, {transform_indices = @transform_2, window_bounds = array<i64: 1, 8, 128>}]} {
    %c0 = arith.constant 0 : index
    %c0_0 = arith.constant 0 : index
    %c0_1 = arith.constant 0 : index
    %0 = vector.load %arg3[%c0, %c0_0, %c0_1] : memref<1x8x128xf32, #tpu.memory_space<vmem>>, vector<1x8x128xf32>
    %c0_2 = arith.constant 0 : index
    %c0_3 = arith.constant 0 : index
    %c0_4 = arith.constant 0 : index
    %1 = vector.load %arg2[%c0_2, %c0_3, %c0_4] : memref<1x1x128xf32, #tpu.memory_space<vmem>>, vector<1x1x128xf32>
    %2 = vector.broadcast %1 : vector<1x1x128xf32> to vector<1x8x128xf32>
    %3 = arith.mulf %0, %2 : vector<1x8x128xf32>
    %c0_5 = arith.constant 0 : index
    %c0_6 = arith.constant 0 : index
    %c0_7 = arith.constant 0 : index
    %4 = vector.load %arg4[%c0_5, %c0_6, %c0_7] : memref<1x8x128xf32, #tpu.memory_space<vmem>>, vector<1x8x128xf32>
    tpu.vector_store %arg4[%c0_5, %c0_6, %c0_7], %3 {strides = array<i32>} : memref<1x8x128xf32, #tpu.memory_space<vmem>>, vector<1x8x128xf32>,
    return
  }
  func.func @transform_0(%arg0: i32, %arg1: i32) -> (i32, i32, i32) {
    %c0_i32 = arith.constant 0 : i32
    %c0_i32_0 = arith.constant 0 : i32
    %c0_i32_1 = arith.constant 0 : i32
    return %arg0, %c0_i32, %c0_i32_0 : i32, i32, i32
  }
  func.func @transform_1(%arg0: i32, %arg1: i32) -> (i32, i32, i32) {
    %c0_i32 = arith.constant 0 : i32
    %c0_i32_0 = arith.constant 0 : i32
    return %arg0, %arg1, %c0_i32 : i32, i32, i32
  }
  func.func @transform_2(%arg0: i32, %arg1: i32) -> (i32, i32, i32) {
    %c0_i32 = arith.constant 0 : i32
    %c0_i32_0 = arith.constant 0 : i32
    return %arg0, %arg1, %c0_i32 : i32, i32, i32
  }
}

</mosaic_0001>

<bundles_post_ra>
// kernel: tpu_custom_call.1
= control target key start
LH: loop header
LB: loop body
LE: loop exit
PB: predicated region body
PF: predicated region fallthrough
CT: control target
= control target key end

     0   :  { %7 = vsyncpa [#allocation3], 0  ;;  %s798_s0 = inlined_call_operand.hbm [shape: f32[4,1,128], index: 0, kind: input, shape index: {}]   ;;  %s799_s1 = inlined_call_operand.hbm [shape: f32[4,8,128], index: 1, kind: input, shape index: {}]   ;;  %s800_s2 = inlined_call_operand.hbm [shape: f32[4,8,128], index: 2, kind: output, shape index: {}]  }
   0x1   :  { %9 = vsyncpa [#allocation3 + $0x1], 0 }
   0x2   :  { %10 = vsyncpa [#allocation6], 0 }
   0x3   :  { %12 = vsyncpa [#allocation6 + $0x1], 0 }
   0x4   :  { %13 = vsyncpa [#allocation4], 0 }
   0x5   :  { %15 = vsyncpa [#allocation4 + $0x1], 0  ;;  %s583_s9 = smov 0   ;;  %s585_s10 = smov 0  }
   0x6   :  { %s587_s11 = smov 0   ;;  %s589_s12 = smov 0  }
   0x7   :  { %s591_s13 = smov 0   ;;  %s593_s14 = smov 0  }
   0x8 LB: > { %s335_s15 = sadd.s32 4294967295, %s563_s14   ;;  %s336_s16 = sadd.s32 4294967294, %s563_s14   ;;  %s563_s14 = sphi %s593_s14, %s21_s14   ;;  %s559_s13 = sphi %s591_s13, %s819_s13   ;;  %s555_s12 = sphi %s589_s12, %s818_s12   ;;  %s551_s11 = sphi %s587_s11, %s817_s11   ;;  %s547_s10 = sphi %s585_s10, %s816_s10   ;;  %s543_s9 = sphi %s583_s9, %s815_s9  }
   0x9   : > { %s33_s17 = sadd.s32 1, %s559_s13  ;;  %s40_s18 = sadd.s32 1, %s551_s11 }
   0xa   : > { %p35_p0 = scmp.ge.s32.totalorder %s33_s17, 4  ;;  %p47_p1 = scmp.ne.s32.totalorder %s551_s11, %s547_s10 }
   0xb   : > { %p48_p2 = scmp.eq.s32.totalorder %s563_s14, 0  ;;  %p53_p3 = scmp.ne.s32.totalorder %s547_s10, %s543_s9 }
   0xc   : > { %s821_s17 = smov (%p35_p0, %s33_s17), 0  ;;  %p54_p5 = scmp.eq.s32.totalorder %s335_s15, 0 }
   0xd   : > { %p624_p4 = por %p48_p2, %p47_p1  ;;  %s37_s20 = ssub.s32 %s559_s13, %s821_s17 }
   0xe   : > { %p107_p6 = scmp.eq.s32.totalorder %s335_s15, 3  ;;  %p38_p7 = scmp.eq.s32.totalorder %s37_s20, 0 }
   0xf   : > { %p630_p8 = por %p54_p5, %p53_p3  ;;  %p113_p10 = scmp.eq.s32.totalorder %s336_s16, 3 }
  0x10   : > { %p634_p9 = por %p107_p6, %p47_p1  ;;  %p367_p12 = scmp.lt.s32.totalorder %s563_s14, 4 }
  0x11   : > { %s804_s21 = scalar_select %p630_p8, 1, 0 }
  0x12   : > { %s805_s22 = scalar_select %p634_p9, 1, 0 }
  0x13   : > { %s639_s23 = scalar_select %p38_p7, %s551_s11, %s40_s18  }
  0x14   : > { %p641_p11 = por %p113_p10, %p53_p3  ;;  %s647_s25 = sand.u32 1, %s551_s11  }
  0x15   : > { %s339_s26 = sshll.u32 %s559_s13, 4  ;;  %s136_s27 = scalar_lea.vmem [#allocation2], %s647_s25 }
  0x16   : > { %s806_s24 = scalar_select %p641_p11, 1, 0 }
  0x17   : > { %s143_s28 = sshll.u32 %s136_s27, 4  ;;  %s654_s3 = scalar_lea.hbm %s798_s0, %s339_s26  ;;  %s656_s28 = int_to_ptr.vmem [resolvable:$true] %s143_s28 }
  0x18   : > { %p660_p13 = pnand %p367_p12, %p624_p4  ;;  %s340_s5 = sshll.u32 %s647_s25, 3 }
  0x19   : > { %s134_s6 = scalar_lea.sflag [#allocation3], %s647_s25  ;;  %s417_s7 = scalar_lea.hbm %s654_s3, 16 }
  0x1a   : > { %p418_p2 = scmp.ne.s32.totalorder %s654_s3, %s417_s7  ;;  %p419_p3 = pneg %p660_p13 }
  0x1b   : > { %s422_s16 = scalar_lea.hbm %s798_s0, 64  ;;  %p423_p4 = scmp.lt.u32.totalorder %s654_s3, %s798_s0 }
  0x1c   : > { %p420_p5 = pnand %p419_p3, %p418_p2  ;;  %p424_p7 = scmp.lt.u32.totalorder %s422_s16, %s417_s7 }
  0x1d   : > { %p426_p12 = scmp.lt.u32.totalorder %s417_s7, %s654_s3 }
  0x1e   : > { %p421_p6 = pneg %p420_p5  ;;  %p425_p10 = por %p424_p7, %p423_p4 }
  0x20   : > { %p427_p0 = por %p426_p12, %p425_p10 }
  0x22   : > { %p428_p1 = pnand %p427_p0, %p421_p6 }
  0x24   : > { %431 = shalt.err (!%p428_p1)
}
  0x25   : > { %s432_s20 = scalar_lea.vmem %s656_s28, 16  ;;  %s565_s26 = smov [#allocation2]  }
  0x26   : > { %p433_p2 = scmp.ne.s32.totalorder %s656_s28, %s432_s20  ;;  %s437_s27 = sshll.u32 %s565_s26, 4  ;;  %s438_s27 = int_to_ptr.vmem [resolvable:$false] %s437_s27 }
  0x27   : > { %s439_s29 = scalar_lea.vmem %s438_s27, 32  ;;  %p440_p9 = scmp.lt.s32.totalorder %s656_s28, %s438_s27 }
  0x28   : > { %p435_p5 = pnand %p433_p2, %p419_p3  ;;  %p441_p4 = scmp.lt.s32.totalorder %s439_s29, %s432_s20 }
  0x2a   : > { %p436_p11 = pneg %p435_p5  ;;  %p442_p7 = por %p441_p4, %p440_p9 }
  0x2c   : > { %p443_p10 = pnand %p442_p7, %p436_p11 }
  0x2e   : > { %446 = shalt.err (!%p443_p10)
}
  0x2f   : > { %359 = dma.hbm_to_vmem [thread:$0]  (!%p660_p13), %s654_s3, 16, %s656_s28, %s134_s6  }
  0x30   : > { %p808_p0 = scmp.lt.s32.totalorder %s563_s14, 5  ;;  %p809_p1 = scmp.ge.s32.totalorder %s563_s14, 1 }
  0x31   : > { %s341_s7 = sshll.u32 %s559_s13, 7  ;;  %s154_s8 = scalar_lea.vmem [#allocation5], %s340_s5 }
  0x32   : > { %p697_p6 = pnand %p809_p1, %p808_p0  ;;  %s162_s15 = sshll.u32 %s154_s8, 4  ;;  %s163_s15 = int_to_ptr.vmem [resolvable:$true] %s162_s15 }
  0x33   : > { %s707_s19 = scalar_lea.hbm %s799_s1, %s341_s7  ;;  %s151_s28 = scalar_lea.sflag [#allocation6], %s647_s25 }
  0x34   : > { %s810_s30 = scalar_select %p697_p6, 1, 0 }
  0x35   : > { %s447_s3 = scalar_lea.hbm %s707_s19, 128  ;;  %s452_s20 = scalar_lea.hbm %s799_s1, 512 }
  0x36   : > { %p448_p9 = scmp.ne.s32.totalorder %s707_s19, %s447_s3  ;;  %p453_p2 = scmp.lt.u32.totalorder %s707_s19, %s799_s1 }
  0x37   : > { %p454_p5 = scmp.lt.u32.totalorder %s452_s20, %s447_s3  ;;  %p456_p7 = scmp.lt.u32.totalorder %s447_s3, %s707_s19 }
  0x38   : > { %p450_p11 = pnand %p448_p9, %p419_p3 }
  0x39   : > { %p455_p4 = por %p454_p5, %p453_p2 }
  0x3a   : > { %p451_p12 = pneg %p450_p11 }
  0x3b   : > { %p457_p10 = por %p456_p7, %p455_p4 }
  0x3d   : > { %p458_p0 = pnand %p457_p10, %p451_p12 }
  0x3f   : > { %461 = shalt.err (!%p458_p0)
}
  0x40   : > { %s462_s25 = scalar_lea.vmem %s163_s15, 128  ;;  %s566_s29 = smov [#allocation5]  }
  0x41   : > { %p463_p1 = scmp.ne.s32.totalorder %s163_s15, %s462_s25  ;;  %s467_s7 = sshll.u32 %s566_s29, 4  ;;  %s468_s7 = int_to_ptr.vmem [resolvable:$false] %s467_s7 }
  0x42   : > { %s469_s8 = scalar_lea.vmem %s468_s7, 256  ;;  %p470_p8 = scmp.lt.s32.totalorder %s163_s15, %s468_s7 }
  0x43   : > { %p465_p9 = pnand %p463_p1, %p419_p3  ;;  %p471_p6 = scmp.lt.s32.totalorder %s469_s8, %s462_s25 }
  0x45   : > { %p466_p11 = pneg %p465_p9  ;;  %p472_p2 = por %p471_p6, %p470_p8 }
  0x47   : > { %p473_p5 = pnand %p472_p2, %p466_p11 }
  0x49   : > { %476 = shalt.err (!%p473_p5)
}
  0x4a   : > { %362 = dma.hbm_to_vmem [thread:$0]  (!%p660_p13), %s707_s19, 128, %s163_s15, %s151_s28  }
  0x4b   : > { %p811_p12 = scmp.ne.s32.totalorder %s810_s30, 0 }
  0x4c   : > { %s732_s16 = sand.u32 (!%p811_p12), 1, %s547_s10   ;;  %p812_p3 = scmp.ne.s32.totalorder (!%p811_p12), %s804_s21, 0 }
  0x4d   : > { %171 = sbr.rel (%p811_p12) target bundleno = 114 (0x72), region = 28  ;;  %s174_s18 = scalar_lea.sflag (!%p811_p12), [#allocation3], %s732_s16 }
  0x4e   : > { %s176_s3 = scalar_lea.vmem (!%p811_p12), [#allocation2], %s732_s16 }
  0x54   : > { %530 = dma.done.wait (%p812_p3), %s174_s18, 16  }
  0x55   : > { %532 = vsyncadd (%p812_p3), %s174_s18, 4294967280  ;;  %s343_s4 = sshll.u32 %s732_s16, 3  ;;  %s182_s15 = scalar_lea.sflag [#allocation6], %s732_s16 }
  0x56   : > { %s185_s30 = scalar_lea.vmem [#allocation5], %s343_s4 }
  0x57   : > { %534 = dma.done.wait (%p812_p3), %s182_s15, 128  }
  0x58   : > { %536 = vsyncadd (%p812_p3), %s182_s15, 4294967168  ;;  %s209_s19 = scalar_lea.vmem [#allocation7], %s343_s4  ;;  %s347_s6 = sshll.u32 %s555_s12, 7  ;;  %v210_v0 = vld [vmem:[%s185_s30] sm:$0xff]  ;;  %v345_v1 = vld [vmem:[%s176_s3] ss:$0 sm:$0xff] }
  0x59   : > { %s235_s28 = sshll.u32 %s209_s19, 4  ;;  %v218_v2 = vmul.f32 %v345_v1, %v210_v0  ;;  %s752_s26 = scalar_lea.hbm %s800_s2, %s347_s6  ;;  %s747_s28 = int_to_ptr.vmem [resolvable:$true] %s235_s28 }
  0x5a   : > { %s221_s21 = scalar_lea.sflag [#allocation4], %s732_s16  ;;  %s477_s27 = scalar_lea.vmem %s747_s28, 128 }
  0x5b   : > { %219 = vst [vmem:[%s209_s19] sm:$0xff] %v218_v2  ;;  %p478_p8 = scmp.ne.s32.totalorder %s747_s28, %s477_s27  ;;  %p813_p13 = scmp.ne.s32.totalorder %s805_s22, 0 }
  0x5c   : > { %s567_s12 = smov [#allocation7]  }
  0x5d   : > { %p479_p6 = pnand %p478_p8, %p813_p13  ;;  %s481_s25 = sshll.u32 %s567_s12, 4  ;;  %s482_s25 = int_to_ptr.vmem [resolvable:$false] %s481_s25 }
  0x5e   : > { %s483_s29 = scalar_lea.vmem %s482_s25, 256  ;;  %p484_p7 = scmp.lt.s32.totalorder %s747_s28, %s482_s25 }
  0x5f   : > { %p480_p4 = pneg %p479_p6  ;;  %p485_p10 = scmp.lt.s32.totalorder %s483_s29, %s477_s27 }
  0x61   : > { %p486_p0 = por %p485_p10, %p484_p7 }
  0x63   : > { %p487_p1 = pnand %p486_p0, %p480_p4 }
  0x65   : > { %490 = shalt.err (!%p487_p1)
}
  0x66   : > { %s491_s7 = scalar_lea.hbm %s752_s26, 128  ;;  %s495_s18 = scalar_lea.hbm %s800_s2, 512 }
  0x67   : > { %p492_p9 = scmp.ne.s32.totalorder %s752_s26, %s491_s7  ;;  %p496_p5 = scmp.lt.u32.totalorder %s752_s26, %s800_s2 }
  0x68   : > { %p497_p12 = scmp.lt.u32.totalorder %s495_s18, %s491_s7  ;;  %p499_p8 = scmp.lt.u32.totalorder %s491_s7, %s752_s26 }
  0x69   : > { %p493_p11 = pnand %p492_p9, %p813_p13 }
  0x6a   : > { %p498_p3 = por %p497_p12, %p496_p5 }
  0x6b   : > { %p494_p2 = pneg %p493_p11 }
  0x6c   : > { %p500_p6 = por %p499_p8, %p498_p3 }
  0x6e   : > { %p501_p4 = pnand %p500_p6, %p494_p2 }
  0x70   : > { %504 = shalt.err (!%p501_p4)
}
  0x71   : > { %354 = dma.vmem_to_hbm [thread:$0]  (%p813_p13), %s747_s28, 128, %s752_s26, %s221_s21  }
  0x72 PF: > { %p368_p7 = scmp.ge.s32.totalorder %s563_s14, 2  ;;  %s247_s15 = sand.u32 1, %s543_s9  }
  0x73   : > { %p814_p10 = scmp.ne.s32.totalorder %s806_s24, 0  ;;  %s248_s30 = scalar_lea.sflag [#allocation4], %s247_s15 }
  0x75   : > { %p364_p0 = pnand %p368_p7, %p814_p10 }
  0x77   : > { %538 = dma.done.wait (!%p364_p0), %s248_s30, 128  }
  0x78   : > { %540 = vsyncadd (!%p364_p0), %s248_s30, 4294967168  ;;  %s21_s14 = sadd.s32 1, %s563_s14   ;;  %s815_s9 = smov %s547_s10 }
  0x79   : > { %p18_p1 = scmp.ge.s32.totalorder %s21_s14, 6   ;;  %s816_s10 = smov %s551_s11 }
  0x7a   : > { %s817_s11 = smov %s639_s23  ;;  %s818_s12 = smov %s559_s13 }
  0x7b   : > { %s819_s13 = smov %s821_s17  ;;  %20 = sbr.rel (!%p18_p1) target bundleno = 8 (0x8), region = 86 }
  0x82   :  { %253 = vsyncpa [#allocation3], 1 }
  0x83   :  { %255 = vsyncpa [#allocation3 + $0x1], 1 }
  0x84   :  { %256 = vsyncpa [#allocation6], 1 }
  0x85   :  { %258 = vsyncpa [#allocation6 + $0x1], 1 }
  0x86   :  { %259 = vsyncpa [#allocation4], 1 }
  0x87   :  { %261 = vsyncpa [#allocation4 + $0x1], 1 }

</bundles_post_ra>
